<compile_context>
chip_gen: v6e
topology: v6e:2x2x1
jax: 0.10.0
libtpu: 0.0.40
codegen_flags: <defaults>
</compile_context>

<pallas_src>
import math

import jax
import jax.numpy as jnp
from jax.experimental import pallas as pl
from jax.experimental.pallas import tpu as pltpu


def _hardswish_kernel(x_ref, o_ref):
    x = x_ref[...]
    xf = x.astype(jnp.float32)  # explicit f32 math (v5e VPU has no bf16 path)
    # hardswish(x) = x * relu6(x + 3) / 6 = x * clip(x/6 + 1/2, 0, 1)
    gate = jnp.clip(xf * (1.0 / 6.0) + 0.5, 0.0, 1.0)
    o_ref[...] = (xf * gate).astype(o_ref.dtype)


_LANE_CANDIDATES = (4096, 2048, 1024, 512, 256, 128)
# Per-block byte budget. With input + output each double-buffered this is
# ~4x per block in VMEM -> ~12 MiB, which fits even v5e's 16 MiB scoped default.
_TARGET_BLOCK_BYTES = 3 * 1024 * 1024


def hardswish(x: jax.Array) -> jax.Array:
    """Apply HardSwish elementwise. Accepts any shape; returns same shape/dtype."""
    orig_shape = x.shape
    orig_dtype = x.dtype
    n = math.prod(orig_shape) if orig_shape else 1
    if n == 0:
        return x

    flat = x.reshape(-1)  # free: bitcast-style reshape of a contiguous array

    # Pick a lane-dense width (multiple of 128) that divides the element count.
    cols = next((c for c in _LANE_CANDIDATES if n % c == 0), None)
    pad = 0
    if cols is None:
        # Rare fallback: element count not a multiple of 128 -> pad tiny 1D tail.
        cols = 128
        pad = (-n) % cols
        flat = jnp.pad(flat, (0, pad))
    rows = (n + pad) // cols

    # Row-tile sized from the VMEM budget; keep the sublane dim a multiple of 8
    # (16 for sub-32-bit dtypes, which pack 2+ rows per sublane).
    itemsize = jnp.dtype(orig_dtype).itemsize
    row_align = 8 if itemsize >= 4 else 16
    max_rows = max(1, _TARGET_BLOCK_BYTES // (cols * itemsize))
    tile_rows = min(rows, max_rows)
    if tile_rows >= row_align:
        tile_rows = (tile_rows // row_align) * row_align
    grid = (pl.cdiv(rows, tile_rows),)

    x2 = flat.reshape(rows, cols)

    out2 = pl.pallas_call(
        _hardswish_kernel,
        out_shape=jax.ShapeDtypeStruct((rows, cols), orig_dtype),
        grid_spec=pltpu.PrefetchScalarGridSpec(
            num_scalar_prefetch=0,
            grid=grid,
            in_specs=[pl.BlockSpec((tile_rows, cols), lambda i: (i, 0))],
            out_specs=pl.BlockSpec((tile_rows, cols), lambda i: (i, 0)),
        ),
        compiler_params=pltpu.CompilerParams(
            dimension_semantics=("parallel",),
            vmem_limit_bytes=32 * 1024 * 1024,  # safe on v5e/v6e/v7x
        ),
    )(x2)

    out = out2.reshape(-1)
    if pad:
        out = out[:n]
    return out.reshape(orig_shape)


def hardswish_ref(x: jax.Array) -> jax.Array:
    """Pure-JAX reference matching the PyTorch formula: x * relu6(x + 3) / 6."""
    return x * jnp.clip(x + 3.0, 0.0, 6.0) / 6.0


if __name__ == "__main__":
    key = jax.random.PRNGKey(0)
    # NCHW, small shapes matching the module: batch=2, channels=4, spatial=16x16
    x = jax.random.normal(key, (2, 4, 16, 16), dtype=jnp.float32) * 3.0

    out = jax.block_until_ready(hardswish(x))
    ref = hardswish_ref(x)

    assert out.shape == x.shape and out.dtype == x.dtype
    assert jnp.allclose(out, ref, atol=1e-5, rtol=1e-5), "mismatch vs reference"

    print("KERNEL_OK")
</pallas_src>

<mosaic_0001>
module attributes {stable_mosaic.version = 11 : i64} {
  func.func @_hardswish_kernel(%arg0: i32, %arg1: memref<1x2048xf32, #tpu.memory_space<vmem>>, %arg2: memref<1x2048xf32, #tpu.memory_space<vmem>>) attributes {dimension_semantics = [#tpu.dimension_semantics<parallel>], iteration_bounds = array<i64: 1>, scalar_prefetch = 0 : i64, scratch_operands = 0 : i64, tpu.core_type = #tpu.core_type<tc>, window_params = [{transform_indices = @transform_0, window_bounds = array<i64: 1, 2048>}, {transform_indices = @transform_1, window_bounds = array<i64: 1, 2048>}]} {
    %c0 = arith.constant 0 : index
    %c0_0 = arith.constant 0 : index
    %0 = vector.load %arg1[%c0, %c0_0] : memref<1x2048xf32, #tpu.memory_space<vmem>>, vector<1x2048xf32>
    %cst = arith.constant 0.166666672 : f32
    %1 = vector.broadcast %cst : f32 to vector<1x2048xf32>
    %2 = arith.mulf %0, %1 : vector<1x2048xf32>
    %cst_1 = arith.constant 5.000000e-01 : f32
    %3 = vector.broadcast %cst_1 : f32 to vector<1x2048xf32>
    %4 = arith.addf %2, %3 : vector<1x2048xf32>
    %cst_2 = arith.constant 0.000000e+00 : f32
    %cst_3 = arith.constant 1.000000e+00 : f32
    %5 = vector.broadcast %cst_2 : f32 to vector<1x2048xf32>
    %6 = arith.maximumf %5, %4 : vector<1x2048xf32>
    %7 = vector.broadcast %cst_3 : f32 to vector<1x2048xf32>
    %8 = arith.minimumf %7, %6 : vector<1x2048xf32>
    %9 = arith.mulf %0, %8 : vector<1x2048xf32>
    %c0_4 = arith.constant 0 : index
    %c0_5 = arith.constant 0 : index
    %10 = vector.load %arg2[%c0_4, %c0_5] : memref<1x2048xf32, #tpu.memory_space<vmem>>, vector<1x2048xf32>
    tpu.vector_store %arg2[%c0_4, %c0_5], %9 {strides = array<i32>} : memref<1x2048xf32, #tpu.memory_space<vmem>>, vector<1x2048xf32>,
    return
  }
  func.func @transform_0(%arg0: i32) -> (i32, i32) {
    %c0_i32 = arith.constant 0 : i32
    %c0_i32_0 = arith.constant 0 : i32
    return %arg0, %c0_i32 : i32, i32
  }
  func.func @transform_1(%arg0: i32) -> (i32, i32) {
    %c0_i32 = arith.constant 0 : i32
    %c0_i32_0 = arith.constant 0 : i32
    return %arg0, %c0_i32 : i32, i32
  }
}

</mosaic_0001>

<bundles_post_ra>
// kernel: tpu_custom_call.1
= control target key start
LH: loop header
LB: loop body
LE: loop exit
PB: predicated region body
PF: predicated region fallthrough
CT: control target
= control target key end

     0   :  { %6 = vsyncpa [#allocation3], 0  ;;  %s114_s0 = inlined_call_operand.hbm [shape: f32[1,2048], index: 0, kind: input, shape index: {}]   ;;  %s115_s1 = inlined_call_operand.hbm [shape: f32[1,2048], index: 1, kind: output, shape index: {}]  }
   0x1   :  { %7 = vsyncpa [#allocation4], 0  ;;  %s96_s6 = smov [#allocation2]  }
   0x2   :  { %s14_s7 = sshll.u32 %s96_s6, 4  ;;  %s15_s7 = int_to_ptr.vmem [resolvable:$true] %s14_s7 }
   0x3   :  { %s60_s8 = scalar_lea.vmem %s15_s7, 256  ;;  %p65_p1 = scmp.lt.s32.totalorder %s15_s7, %s15_s7 }
   0x4   :  { %p61_p0 = scmp.ne.s32.totalorder %s15_s7, %s60_s8  ;;  %p66_p2 = scmp.lt.s32.totalorder %s60_s8, %s60_s8 }
   0x6   :  { %p67_p3 = por %p66_p2, %p65_p1 }
   0x8   :  { %p68_p4 = pnand %p67_p3, %p61_p0 }
   0xa   :  { %71 = shalt.err (!%p68_p4)
}
   0xb   :  { %17 = dma.hbm_to_vmem [thread:$0]  %s114_s0, 256, %s15_s7, [#allocation3]  }
   0xc   :  { %92 = dma.done.wait [#allocation3], 256  }
   0xd   :  { %93 = vsyncadd [#allocation3], 4294967040  ;;  %v21_v0 = vld [vmem:[#allocation2] sm:$0xff]  ;;  %v22_v1 = vld [vmem:[#allocation2 + $0x8] sm:$0xff]  ;;  %s97_s11 = smov [#allocation5]  }
   0xe   :  { %v23_v2 = vmul.f32 0.16666667, %v21_v0  ;;  %v24_v3 = vmul.f32 0.16666667, %v22_v1  ;;  %s41_s12 = sshll.u32 %s97_s11, 4  ;;  %s42_s12 = int_to_ptr.vmem [resolvable:$true] %s41_s12 }
   0xf   :  { %s72_s0 = scalar_lea.vmem %s42_s12, 256  ;;  %p77_p6 = scmp.lt.s32.totalorder %s42_s12, %s42_s12 }
  0x10   :  { %v25_v4 = vadd.f32 0.5, %v23_v2  ;;  %v26_v5 = vadd.f32 0.5, %v24_v3  ;;  %p73_p5 = scmp.ne.s32.totalorder %s42_s12, %s72_s0  ;;  %p78_p7 = scmp.lt.s32.totalorder %s72_s0, %s72_s0 }
  0x12   :  { %v27_v6 = vmax.f32 %v25_v4, 0.0  ;;  %v28_v7 = vmax.f32 %v26_v5, 0.0  ;;  %p79_p8 = por %p78_p7, %p77_p6 }
  0x14   :  { %v29_v8 = vmin.f32 %v27_v6, 1.0  ;;  %v30_v9 = vmin.f32 %v28_v7, 1.0  ;;  %p80_p9 = pnand %p79_p8, %p73_p5 }
  0x16   :  { %v31_v10 = vmul.f32 %v29_v8, %v21_v0  ;;  %v32_v11 = vmul.f32 %v30_v9, %v22_v1 }
  0x18   :  { %33 = vst [vmem:[#allocation5] sm:$0xff] %v31_v10  ;;  %34 = vst [vmem:[#allocation5 + $0x8] sm:$0xff] %v32_v11 }
  0x19   :  { %83 = shalt.err (!%p80_p9)
}
  0x1a   :  { %44 = dma.vmem_to_hbm [thread:$0]  %s42_s12, 256, %s115_s1, [#allocation4]  }
  0x1b   :  { %94 = dma.done.wait [#allocation4], 256  }
  0x1c   :  { %95 = vsyncadd [#allocation4], 4294967040 }
  0x1d   :  { %48 = vsyncpa [#allocation3], 1 }
  0x1e   :  { %49 = vsyncpa [#allocation4], 1 }

</bundles_post_ra>
